<compile_context>
chip_gen: v5e
topology: v5e:2x2
jax: 0.10.0
libtpu: 0.0.40
codegen_flags: <defaults>
</compile_context>

<pallas_src>
import functools

import jax
import jax.numpy as jnp
from jax.experimental import pallas as pl
from jax.experimental.pallas import tpu as pltpu


def _round_up(x, m):
    return (x + m - 1) // m * m


def _supcon_kernel(alab_ref, clab_ref, a_ref, c_ref, out_ref,
                   m_sc, sexp_sc, smadc_sc, sm_sc, *,
                   inv_temperature, loss_scale, n_valid, a_valid,
                   tile_a, tile_n, has_col_pad):
    i = pl.program_id(0)          # anchor row-tile (parallel)
    k = pl.program_id(1)          # contrast col-tile (arbitrary / reduction)
    num_k = pl.num_programs(1)

    @pl.when(k == 0)
    def _init():
        m_sc[...] = jnp.full_like(m_sc, -jnp.inf)
        sexp_sc[...] = jnp.zeros_like(sexp_sc)
        smadc_sc[...] = jnp.zeros_like(smadc_sc)
        sm_sc[...] = jnp.zeros_like(sm_sc)

    # anchor . contrast^T / temperature for this (row, col) tile: bf16 MXU, f32 acc.
    adc = jax.lax.dot_general(
        a_ref[...], c_ref[...], (((1,), (1,)), ((), ())),
        preferred_element_type=jnp.float32) * inv_temperature        # [tA, tN]

    labels_eq = alab_ref[...] == clab_ref[...]                       # [tA, tN] bool

    # Only tiles that contain self-contrast (diagonal) entries or padded contrast
    # columns pay for the per-element iota/compare masking.  Everything else takes
    # the cheap pass-through branch (labels_eq already IS the positive mask there).
    diag_hit = (i * tile_a < (k + 1) * tile_n) & (k * tile_n < (i + 1) * tile_a)
    needs_mask = diag_hit
    if has_col_pad:                                   # static (Python bool)
        needs_mask = needs_mask | (k == num_k - 1)

    def _masked(adc_in, eq):
        row_g = i * tile_a + jax.lax.broadcasted_iota(jnp.int32, (tile_a, tile_n), 0)
        col_g = k * tile_n + jax.lax.broadcasted_iota(jnp.int32, (tile_a, tile_n), 1)
        keep = row_g != col_g                         # drop self-contrast
        if has_col_pad:
            keep = keep & (col_g < n_valid)           # drop padded contrast columns
        adc_lse = jnp.where(keep, adc_in, -jnp.inf)
        posf = (keep & eq).astype(jnp.float32)
        return adc_lse, posf

    def _plain(adc_in, eq):
        return adc_in, eq.astype(jnp.float32)

    adc_lse, posf = jax.lax.cond(needs_mask, _masked, _plain, adc, labels_eq)

    # Online (flash-style) masked log-sum-exp over the contrast axis.
    tile_max = jnp.max(adc_lse, axis=1, keepdims=True)
    m_new = jnp.maximum(m_sc[...], tile_max)
    alpha = jnp.exp(m_sc[...] - m_new)
    p = jnp.exp(adc_lse - m_new)
    sexp_sc[...] = alpha * sexp_sc[...] + jnp.sum(p, axis=1, keepdims=True)
    m_sc[...] = m_new

    smadc_sc[...] = smadc_sc[...] + jnp.sum(posf * adc, axis=1, keepdims=True)
    sm_sc[...] = sm_sc[...] + jnp.sum(posf, axis=1, keepdims=True)

    @pl.when(k == num_k - 1)
    def _finalize():
        # sum(m*log_prob) = sum(m*adc) - sum(m) * (max + log(sum exp(adc - max)))
        log_denom = m_sc[...] + jnp.log(sexp_sc[...])
        sum_mlogp = smadc_sc[...] - sm_sc[...] * log_denom
        sm = sm_sc[...]
        ok = sm > 0.0
        mean_lp = sum_mlogp / jnp.where(ok, sm, 1.0)  # exact divide, once per row-tile
        loss_col = loss_scale * mean_lp               # [tA, 1]
        rows = i * tile_a + jax.lax.broadcasted_iota(jnp.int32, (tile_a, 1), 0)
        # TODO(synk): anchors with zero positives yield 0 here; PyTorch yields NaN.
        out_ref[...] = jnp.where(ok & (rows < a_valid), loss_col, 0.0)


def supcon_loss(features, labels=None, mask=None, *,
                temperature=0.07, contrast_mode='all', base_temperature=0.07,
                block_a=512, block_n=512):
    """JAX/Pallas equivalent of SupConLoss.forward (scalar loss)."""
    if features.ndim < 3:
        raise ValueError('`features` needs to be [bsz, n_views, ...], '
                         'at least 3 dimensions are required')
    bsz, n_views = features.shape[0], features.shape[1]
    feats = features.reshape(bsz, n_views, -1)
    d = feats.shape[-1]

    if labels is not None and mask is not None:
        raise ValueError('Cannot define both `labels` and `mask`')
    if mask is not None:
        # TODO(synk): explicit (possibly asymmetric) [bsz, bsz] contrastive masks
        # are not expressible by the in-kernel label-compare fast path.
        raise NotImplementedError('explicit `mask` is not supported by this kernel')
    if labels is None:
        labels_vec = jnp.arange(bsz, dtype=jnp.int32)   # eye(bsz) == unique labels
    else:
        labels_vec = jnp.asarray(labels).reshape(-1).astype(jnp.int32)
        if labels_vec.shape[0] != bsz:
            raise ValueError('Num of labels does not match num of features')

    if contrast_mode == 'one':
        anchor_count = 1
    elif contrast_mode == 'all':
        anchor_count = n_views
    else:
        raise ValueError('Unknown mode: {}'.format(contrast_mode))

    A = anchor_count * bsz
    N = n_views * bsz
    d_pad = _round_up(d, 128)          # clean bf16 MXU K extent / lane packing

    # ---- tile selection -------------------------------------------------------
    tile_a = block_a if A > block_a else _round_up(A, 8)
    tile_n = block_n if N > block_n else _round_up(N, 8)
    # Keep >= 2 row tiles so the "parallel" row axis can shard across 2 TensorCores.
    if A >= 16 and _round_up(A, tile_a) // tile_a < 2:
        tile_a = _round_up((A + 1) // 2, 8)

    # VMEM-aware shrink (v7x physical VMEM is 64 MiB; budget well under that).
    def _footprint(ta, tn):
        feat = 2 * (ta + tn) * d_pad * 2        # double-buffered bf16 tiles
        inter = 4 * ta * tn * 4                 # adc + mask/exp intermediates (f32)
        rest = 2 * (ta + tn) * 4 + 6 * ta * 4
        return feat + inter + rest
    budget = 38 * 1024 * 1024
    while _footprint(tile_a, tile_n) > budget and tile_n >= 256 and tile_n % 256 == 0:
        tile_n //= 2
    while _footprint(tile_a, tile_n) > budget and tile_a >= 256 and tile_a % 256 == 0:
        tile_a //= 2

    A_pad, N_pad = _round_up(A, tile_a), _round_up(N, tile_n)
    grid = (A_pad // tile_a, N_pad // tile_n)

    # ---- feature / label buffers ---------------------------------------------
    if contrast_mode == 'all':
        # Sample-major ordering: no HBM transpose.  The loss is invariant to a
        # common permutation of anchor & contrast rows, and self-exclusion stays
        # on the diagonal.  Same padded bf16 buffer for both MXU operands.
        rows = max(A_pad, N_pad)
        feat_bf = jnp.pad(feats.reshape(A, d).astype(jnp.bfloat16),
                          ((0, rows - A), (0, d_pad - d)))
        anchor_bf = feat_bf
        contrast_bf = feat_bf
        contrast_labels = jnp.repeat(labels_vec, n_views)
        anchor_labels = contrast_labels
    else:  # 'one': keep view-major contrast so self-exclusion stays row_g == col_g
        cf = jnp.transpose(feats, (1, 0, 2)).reshape(N, d)
        contrast_bf = jnp.pad(cf.astype(jnp.bfloat16),
                              ((0, N_pad - N), (0, d_pad - d)))
        anchor_bf = jnp.pad(feats[:, 0].astype(jnp.bfloat16),
                            ((0, A_pad - A), (0, d_pad - d)))
        contrast_labels = jnp.tile(labels_vec, n_views)
        anchor_labels = labels_vec

    alab = jnp.pad(anchor_labels.astype(jnp.int32), (0, A_pad - A),
                   constant_values=-1).reshape(A_pad, 1)
    clab = jnp.pad(contrast_labels.astype(jnp.int32), (0, N_pad - N),
                   constant_values=-2).reshape(1, N_pad)

    kernel = functools.partial(
        _supcon_kernel,
        inv_temperature=float(1.0 / temperature),
        loss_scale=float(-(temperature / base_temperature)),
        n_valid=N, a_valid=A, tile_a=tile_a, tile_n=tile_n,
        has_col_pad=(N % tile_n != 0))

    # ~75% of physical VMEM: 48 MiB on v7x (64 MiB phys), 96 MiB on v5e/v6e (128).
    try:
        vmem_cap = int(pltpu.get_tpu_info().vmem_capacity_bytes)
    except Exception:
        vmem_cap = 64 * 1024 * 1024
    vmem_limit = max(32 * 1024 * 1024,
                     min(vmem_cap * 3 // 4, 96 * 1024 * 1024))

    cost = pl.CostEstimate(
        flops=2 * A * N * d_pad + 12 * A_pad * N_pad,
        transcendentals=A_pad * N_pad,
        bytes_accessed=(grid[0] * N_pad * d_pad * 2 + A_pad * d_pad * 2
                        + (A_pad + N_pad) * 4 + A_pad * 4))

    per_anchor = pl.pallas_call(
        kernel,
        out_shape=jax.ShapeDtypeStruct((A_pad, 1), jnp.float32),
        grid=grid,
        in_specs=[
            pl.BlockSpec((tile_a, 1), lambda i, k: (i, 0)),      # anchor labels
            pl.BlockSpec((1, tile_n), lambda i, k: (0, k)),      # contrast labels
            pl.BlockSpec((tile_a, d_pad), lambda i, k: (i, 0)),  # anchor tile (resident over k)
            # NOTE: bump to pipeline_mode=pl.Buffered(3) here if the streamed
            # contrast DMA is still exposed on v5e with small tiles.
            pl.BlockSpec((tile_n, d_pad), lambda i, k: (k, 0)),  # contrast tile (streamed)
        ],
        out_specs=pl.BlockSpec((tile_a, 1), lambda i, k: (i, 0)),
        scratch_shapes=[
            pltpu.VMEM((tile_a, 1), jnp.float32),   # running row max
            pltpu.VMEM((tile_a, 1), jnp.float32),   # masked sum exp(adc - max)
            pltpu.VMEM((tile_a, 1), jnp.float32),   # sum(mask * adc)
            pltpu.VMEM((tile_a, 1), jnp.float32),   # sum(mask)
        ],
        compiler_params=pltpu.CompilerParams(
            dimension_semantics=("parallel", "arbitrary"),
            vmem_limit_bytes=vmem_limit),
        cost_estimate=cost,
    )(alab, clab, anchor_bf, contrast_bf)

    # Padded / zero-positive anchors were written as 0; mean over the A real anchors.
    return jnp.sum(per_anchor) / A


def _supcon_ref(features, labels, temperature=0.07, base_temperature=0.07,
                contrast_mode='all'):
    """Pure-JAX reference of the PyTorch forward (view-major ordering).

    Uses the same bf16-quantized features as the kernel's MXU inputs.
    """
    bsz, n_views = features.shape[0], features.shape[1]
    feats = features.reshape(bsz, n_views, -1)
    cf = jnp.transpose(feats, (1, 0, 2)).reshape(n_views * bsz, -1)
    cf = cf.astype(jnp.bfloat16).astype(jnp.float32)
    if contrast_mode == 'one':
        af, ac = cf[:bsz], 1
    else:
        af, ac = cf, n_views
    A, N = ac * bsz, n_views * bsz
    adc = jnp.dot(af, cf.T, preferred_element_type=jnp.float32) / temperature
    logits = adc - jnp.max(adc, axis=1, keepdims=True)
    base = (labels.reshape(-1, 1) == labels.reshape(1, -1)).astype(jnp.float32)
    m = jnp.tile(base, (ac, n_views))
    lm = (jnp.arange(N)[None, :] != jnp.arange(A)[:, None]).astype(jnp.float32)
    m = m * lm
    exp_logits = jnp.exp(logits) * lm
    log_prob = logits - jnp.log(jnp.sum(exp_logits, axis=1, keepdims=True))
    mlpp = jnp.sum(m * log_prob, axis=1) / jnp.sum(m, axis=1)
    return jnp.mean(-(temperature / base_temperature) * mlpp)


if __name__ == "__main__":
    key = jax.random.PRNGKey(0)
    ks = jax.random.split(key, 8)

    def _norm(x):
        return x / jnp.linalg.norm(x, axis=-1, keepdims=True)

    # Case 1: tiny, contrast_mode='all'.
    f1 = _norm(jax.random.normal(ks[0], (8, 2, 32), dtype=jnp.float32))
    l1 = jax.random.randint(ks[1], (8,), 0, 3)
    o1 = jax.block_until_ready(supcon_loss(f1, labels=l1))
    r1 = _supcon_ref(f1, l1)
    assert jnp.allclose(o1, r1, rtol=1e-2, atol=1e-2), (o1, r1)

    # Case 2: A=N=144 -> two row tiles (megacore split), single column tile.
    f2 = _norm(jax.random.normal(ks[2], (72, 2, 64), dtype=jnp.float32))
    l2 = jax.random.randint(ks[3], (72,), 0, 4)
    o2 = jax.block_until_ready(supcon_loss(f2, labels=l2))
    r2 = _supcon_ref(f2, l2)
    assert jnp.allclose(o2, r2, rtol=1e-2, atol=1e-2), (o2, r2)

    # Case 3: forced small blocks -> multiple column tiles, column padding, and
    # off-diagonal tiles that take the cheap (unmasked) branch.
    f3 = _norm(jax.random.normal(ks[4], (100, 2, 48), dtype=jnp.float32))
    l3 = jax.random.randint(ks[5], (100,), 0, 5)
    o3 = jax.block_until_ready(supcon_loss(f3, labels=l3, block_a=64, block_n=128))
    r3 = _supcon_ref(f3, l3)
    assert jnp.allclose(o3, r3, rtol=1e-2, atol=1e-2), (o3, r3)

    # Case 4: contrast_mode='one' (view-major contrast ordering).
    f4 = _norm(jax.random.normal(ks[6], (40, 2, 32), dtype=jnp.float32))
    l4 = jax.random.randint(ks[7], (40,), 0, 4)
    o4 = jax.block_until_ready(supcon_loss(f4, labels=l4, contrast_mode='one'))
    r4 = _supcon_ref(f4, l4, contrast_mode='one')
    assert jnp.allclose(o4, r4, rtol=1e-2, atol=1e-2), (o4, r4)

    print("KERNEL_OK")
</pallas_src>

<mosaic_0001>
module attributes {stable_mosaic.version = 11 : i64} {
  func.func @_supcon_kernel(%arg0: i32, %arg1: i32, %arg2: memref<8x1xi32, #tpu.memory_space<vmem>>, %arg3: memref<1x16xi32, #tpu.memory_space<vmem>>, %arg4: memref<8x128xbf16, #tpu.memory_space<vmem>>, %arg5: memref<16x128xbf16, #tpu.memory_space<vmem>>, %arg6: memref<8x1xf32, #tpu.memory_space<vmem>>, %arg7: memref<8x1xf32, #tpu.memory_space<vmem>>, %arg8: memref<8x1xf32, #tpu.memory_space<vmem>>, %arg9: memref<8x1xf32, #tpu.memory_space<vmem>>, %arg10: memref<8x1xf32, #tpu.memory_space<vmem>>) attributes {dimension_semantics = [#tpu.dimension_semantics<parallel>, #tpu.dimension_semantics<arbitrary>], iteration_bounds = array<i64: 2, 1>, scalar_prefetch = 0 : i64, scratch_operands = 4 : i64, tpu.core_type = #tpu.core_type<tc>, window_params = [{transform_indices = @transform_0, window_bounds = array<i64: 8, 1>}, {transform_indices = @transform_1, window_bounds = array<i64: 1, 16>}, {transform_indices = @transform_2, window_bounds = array<i64: 8, 128>}, {transform_indices = @transform_3, window_bounds = array<i64: 16, 128>}, {transform_indices = @transform_4, window_bounds = array<i64: 8, 1>}]} {
    %c0_i32 = arith.constant 0 : i32
    %0 = arith.cmpi eq, %arg1, %c0_i32 : i32
    %1 = arith.extui %0 : i1 to i32
    %c0_i32_0 = arith.constant 0 : i32
    %2 = arith.cmpi ne, %1, %c0_i32_0 : i32
    scf.if %2 {
      %cst_37 = arith.constant 0xFF800000 : f32
      %56 = vector.broadcast %cst_37 : f32 to vector<8x1xf32>
      %c0_38 = arith.constant 0 : index
      %c0_39 = arith.constant 0 : index
      %57 = vector.load %arg7[%c0_38, %c0_39] : memref<8x1xf32, #tpu.memory_space<vmem>>, vector<8x1xf32>
      tpu.vector_store %arg7[%c0_38, %c0_39], %56 {strides = array<i32>} : memref<8x1xf32, #tpu.memory_space<vmem>>, vector<8x1xf32>,
      %cst_40 = arith.constant 0.000000e+00 : f32
      %58 = vector.broadcast %cst_40 : f32 to vector<8x1xf32>
      %c0_41 = arith.constant 0 : index
      %c0_42 = arith.constant 0 : index
      %59 = vector.load %arg8[%c0_41, %c0_42] : memref<8x1xf32, #tpu.memory_space<vmem>>, vector<8x1xf32>
      tpu.vector_store %arg8[%c0_41, %c0_42], %58 {strides = array<i32>} : memref<8x1xf32, #tpu.memory_space<vmem>>, vector<8x1xf32>,
      %cst_43 = arith.constant 0.000000e+00 : f32
      %60 = vector.broadcast %cst_43 : f32 to vector<8x1xf32>
      %c0_44 = arith.constant 0 : index
      %c0_45 = arith.constant 0 : index
      %61 = vector.load %arg9[%c0_44, %c0_45] : memref<8x1xf32, #tpu.memory_space<vmem>>, vector<8x1xf32>
      tpu.vector_store %arg9[%c0_44, %c0_45], %60 {strides = array<i32>} : memref<8x1xf32, #tpu.memory_space<vmem>>, vector<8x1xf32>,
      %cst_46 = arith.constant 0.000000e+00 : f32
      %62 = vector.broadcast %cst_46 : f32 to vector<8x1xf32>
      %c0_47 = arith.constant 0 : index
      %c0_48 = arith.constant 0 : index
      %63 = vector.load %arg10[%c0_47, %c0_48] : memref<8x1xf32, #tpu.memory_space<vmem>>, vector<8x1xf32>
      tpu.vector_store %arg10[%c0_47, %c0_48], %62 {strides = array<i32>} : memref<8x1xf32, #tpu.memory_space<vmem>>, vector<8x1xf32>,
    } else {
    }
    %c0 = arith.constant 0 : index
    %c0_1 = arith.constant 0 : index
    %3 = vector.load %arg4[%c0, %c0_1] : memref<8x128xbf16, #tpu.memory_space<vmem>>, vector<8x128xbf16>
    %c0_2 = arith.constant 0 : index
    %c0_3 = arith.constant 0 : index
    %4 = vector.load %arg5[%c0_2, %c0_3] : memref<16x128xbf16, #tpu.memory_space<vmem>>, vector<16x128xbf16>
    %cst = arith.constant dense<0.000000e+00> : vector<8x16xf32>
    %5 = tpu.matmul %3, %4, %cst {dimension_numbers = #tpu.dot_dimension_numbers<[1], [1], [0], [0], [0, 0, 1, 0], [], []>} : vector<8x128xbf16>, vector<16x128xbf16>, vector<8x16xf32> -> vector<8x16xf32>
    %cst_4 = arith.constant 14.2857141 : f32
    %6 = vector.broadcast %cst_4 : f32 to vector<8x16xf32>
    %7 = arith.mulf %5, %6 : vector<8x16xf32>
    %c0_5 = arith.constant 0 : index
    %c0_6 = arith.constant 0 : index
    %8 = vector.load %arg2[%c0_5, %c0_6] : memref<8x1xi32, #tpu.memory_space<vmem>>, vector<8x1xi32>
    %c0_7 = arith.constant 0 : index
    %c0_8 = arith.constant 0 : index
    %9 = vector.load %arg3[%c0_7, %c0_8] : memref<1x16xi32, #tpu.memory_space<vmem>>, vector<1x16xi32>
    %10 = vector.broadcast %8 : vector<8x1xi32> to vector<8x16xi32>
    %11 = vector.broadcast %9 : vector<1x16xi32> to vector<8x16xi32>
    %12 = arith.cmpi eq, %10, %11 : vector<8x16xi32>
    %c8_i32 = arith.constant 8 : i32
    %13 = arith.muli %arg0, %c8_i32 : i32
    %c1_i32 = arith.constant 1 : i32
    %14 = arith.addi %arg1, %c1_i32 : i32
    %c16_i32 = arith.constant 16 : i32
    %15 = arith.muli %14, %c16_i32 : i32
    %16 = arith.cmpi slt, %13, %15 : i32
    %c16_i32_9 = arith.constant 16 : i32
    %17 = arith.muli %arg1, %c16_i32_9 : i32
    %c1_i32_10 = arith.constant 1 : i32
    %18 = arith.addi %arg0, %c1_i32_10 : i32
    %c8_i32_11 = arith.constant 8 : i32
    %19 = arith.muli %18, %c8_i32_11 : i32
    %20 = arith.cmpi slt, %17, %19 : i32
    %21 = arith.andi %16, %20 : i1
    %22 = arith.extui %21 : i1 to i32
    %c0_i32_12 = arith.constant 0 : i32
    %23 = arith.cmpi ne, %22, %c0_i32_12 : i32
    %24:2 = scf.if %23 -> (vector<8x16xf32>, vector<8x16xf32>) {
      %c8_i32_37 = arith.constant 8 : i32
      %56 = arith.muli %arg0, %c8_i32_37 : i32
      %57 = tpu.iota {dimensions = array<i32: 0>} : vector<8x16xi32>
      %58 = vector.broadcast %56 : i32 to vector<8x16xi32>
      %59 = arith.addi %58, %57 : vector<8x16xi32>
      %c16_i32_38 = arith.constant 16 : i32
      %60 = arith.muli %arg1, %c16_i32_38 : i32
      %61 = tpu.iota {dimensions = array<i32: 1>} : vector<8x16xi32>
      %62 = vector.broadcast %60 : i32 to vector<8x16xi32>
      %63 = arith.addi %62, %61 : vector<8x16xi32>
      %64 = arith.cmpi ne, %59, %63 : vector<8x16xi32>
      %cst_39 = arith.constant 0xFF800000 : f32
      %65 = vector.broadcast %cst_39 : f32 to vector<8x16xf32>
      %66 = arith.select %64, %7, %65 : vector<8x16xi1>, vector<8x16xf32>
      %67 = arith.andi %64, %12 : vector<8x16xi1>
      %68 = arith.extui %67 : vector<8x16xi1> to vector<8x16xi32>
      %69 = arith.sitofp %68 : vector<8x16xi32> to vector<8x16xf32>
      scf.yield %66, %69 : vector<8x16xf32>, vector<8x16xf32>
    } else {
      %56 = arith.extui %12 : vector<8x16xi1> to vector<8x16xi32>
      %57 = arith.sitofp %56 : vector<8x16xi32> to vector<8x16xf32>
      scf.yield %7, %57 : vector<8x16xf32>, vector<8x16xf32>
    }
    %cst_13 = arith.constant dense<0xFF800000> : vector<8xf32>
    %25 = vector.multi_reduction <maximumf>, %24#0, %cst_13 [1] : vector<8x16xf32> to vector<8xf32>
    %26 = vector.shape_cast %25 : vector<8xf32> to vector<8x1xf32>
    %c0_14 = arith.constant 0 : index
    %c0_15 = arith.constant 0 : index
    %27 = vector.load %arg7[%c0_14, %c0_15] : memref<8x1xf32, #tpu.memory_space<vmem>>, vector<8x1xf32>
    %28 = arith.maximumf %27, %26 : vector<8x1xf32>
    %c0_16 = arith.constant 0 : index
    %c0_17 = arith.constant 0 : index
    %29 = vector.load %arg7[%c0_16, %c0_17] : memref<8x1xf32, #tpu.memory_space<vmem>>, vector<8x1xf32>
    %30 = arith.subf %29, %28 : vector<8x1xf32>
    %31 = math.exp %30 : vector<8x1xf32>
    %32 = vector.broadcast %28 : vector<8x1xf32> to vector<8x16xf32>
    %33 = arith.subf %24#0, %32 : vector<8x16xf32>
    %34 = math.exp %33 : vector<8x16xf32>
    %c0_18 = arith.constant 0 : index
    %c0_19 = arith.constant 0 : index
    %35 = vector.load %arg8[%c0_18, %c0_19] : memref<8x1xf32, #tpu.memory_space<vmem>>, vector<8x1xf32>
    %36 = arith.mulf %31, %35 : vector<8x1xf32>
    %cst_20 = arith.constant dense<0.000000e+00> : vector<8xf32>
    %37 = vector.multi_reduction <add>, %34, %cst_20 [1] : vector<8x16xf32> to vector<8xf32>
    %38 = vector.shape_cast %37 : vector<8xf32> to vector<8x1xf32>
    %39 = arith.addf %36, %38 : vector<8x1xf32>
    %c0_21 = arith.constant 0 : index
    %c0_22 = arith.constant 0 : index
    %40 = vector.load %arg8[%c0_21, %c0_22] : memref<8x1xf32, #tpu.memory_space<vmem>>, vector<8x1xf32>
    tpu.vector_store %arg8[%c0_21, %c0_22], %39 {strides = array<i32>} : memref<8x1xf32, #tpu.memory_space<vmem>>, vector<8x1xf32>,
    %c0_23 = arith.constant 0 : index
    %c0_24 = arith.constant 0 : index
    %41 = vector.load %arg7[%c0_23, %c0_24] : memref<8x1xf32, #tpu.memory_space<vmem>>, vector<8x1xf32>
    tpu.vector_store %arg7[%c0_23, %c0_24], %28 {strides = array<i32>} : memref<8x1xf32, #tpu.memory_space<vmem>>, vector<8x1xf32>,
    %c0_25 = arith.constant 0 : index
    %c0_26 = arith.constant 0 : index
    %42 = vector.load %arg9[%c0_25, %c0_26] : memref<8x1xf32, #tpu.memory_space<vmem>>, vector<8x1xf32>
    %43 = arith.mulf %24#1, %7 : vector<8x16xf32>
    %cst_27 = arith.constant dense<0.000000e+00> : vector<8xf32>
    %44 = vector.multi_reduction <add>, %43, %cst_27 [1] : vector<8x16xf32> to vector<8xf32>
    %45 = vector.shape_cast %44 : vector<8xf32> to vector<8x1xf32>
    %46 = arith.addf %42, %45 : vector<8x1xf32>
    %c0_28 = arith.constant 0 : index
    %c0_29 = arith.constant 0 : index
    %47 = vector.load %arg9[%c0_28, %c0_29] : memref<8x1xf32, #tpu.memory_space<vmem>>, vector<8x1xf32>
    tpu.vector_store %arg9[%c0_28, %c0_29], %46 {strides = array<i32>} : memref<8x1xf32, #tpu.memory_space<vmem>>, vector<8x1xf32>,
    %c0_30 = arith.constant 0 : index
    %c0_31 = arith.constant 0 : index
    %48 = vector.load %arg10[%c0_30, %c0_31] : memref<8x1xf32, #tpu.memory_space<vmem>>, vector<8x1xf32>
    %cst_32 = arith.constant dense<0.000000e+00> : vector<8xf32>
    %49 = vector.multi_reduction <add>, %24#1, %cst_32 [1] : vector<8x16xf32> to vector<8xf32>
    %50 = vector.shape_cast %49 : vector<8xf32> to vector<8x1xf32>
    %51 = arith.addf %48, %50 : vector<8x1xf32>
    %c0_33 = arith.constant 0 : index
    %c0_34 = arith.constant 0 : index
    %52 = vector.load %arg10[%c0_33, %c0_34] : memref<8x1xf32, #tpu.memory_space<vmem>>, vector<8x1xf32>
    tpu.vector_store %arg10[%c0_33, %c0_34], %51 {strides = array<i32>} : memref<8x1xf32, #tpu.memory_space<vmem>>, vector<8x1xf32>,
    %c0_i32_35 = arith.constant 0 : i32
    %53 = arith.cmpi eq, %arg1, %c0_i32_35 : i32
    %54 = arith.extui %53 : i1 to i32
    %c0_i32_36 = arith.constant 0 : i32
    %55 = arith.cmpi ne, %54, %c0_i32_36 : i32
    scf.if %55 {
      %c0_37 = arith.constant 0 : index
      %c0_38 = arith.constant 0 : index
      %56 = vector.load %arg7[%c0_37, %c0_38] : memref<8x1xf32, #tpu.memory_space<vmem>>, vector<8x1xf32>
      %c0_39 = arith.constant 0 : index
      %c0_40 = arith.constant 0 : index
      %57 = vector.load %arg8[%c0_39, %c0_40] : memref<8x1xf32, #tpu.memory_space<vmem>>, vector<8x1xf32>
      %58 = math.log %57 : vector<8x1xf32>
      %59 = arith.addf %56, %58 : vector<8x1xf32>
      %c0_41 = arith.constant 0 : index
      %c0_42 = arith.constant 0 : index
      %60 = vector.load %arg9[%c0_41, %c0_42] : memref<8x1xf32, #tpu.memory_space<vmem>>, vector<8x1xf32>
      %c0_43 = arith.constant 0 : index
      %c0_44 = arith.constant 0 : index
      %61 = vector.load %arg10[%c0_43, %c0_44] : memref<8x1xf32, #tpu.memory_space<vmem>>, vector<8x1xf32>
      %62 = arith.mulf %61, %59 : vector<8x1xf32>
      %63 = arith.subf %60, %62 : vector<8x1xf32>
      %c0_45 = arith.constant 0 : index
      %c0_46 = arith.constant 0 : index
      %64 = vector.load %arg10[%c0_45, %c0_46] : memref<8x1xf32, #tpu.memory_space<vmem>>, vector<8x1xf32>
      %cst_47 = arith.constant 0.000000e+00 : f32
      %65 = vector.broadcast %cst_47 : f32 to vector<8x1xf32>
      %66 = arith.cmpf ogt, %64, %65 : vector<8x1xf32>
      %cst_48 = arith.constant 1.000000e+00 : f32
      %67 = vector.broadcast %cst_48 : f32 to vector<8x1xf32>
      %68 = arith.select %66, %64, %67 : vector<8x1xi1>, vector<8x1xf32>
      %69 = arith.divf %63, %68 : vector<8x1xf32>
      %cst_49 = arith.constant -1.000000e+00 : f32
      %70 = vector.broadcast %cst_49 : f32 to vector<8x1xf32>
      %71 = arith.mulf %70, %69 : vector<8x1xf32>
      %c8_i32_50 = arith.constant 8 : i32
      %72 = arith.muli %arg0, %c8_i32_50 : i32
      %73 = tpu.iota {dimensions = array<i32: 0>} : vector<8x1xi32>
      %74 = vector.broadcast %72 : i32 to vector<8x1xi32>
      %75 = arith.addi %74, %73 : vector<8x1xi32>
      %c16_i32_51 = arith.constant 16 : i32
      %76 = vector.broadcast %c16_i32_51 : i32 to vector<8x1xi32>
      %77 = arith.cmpi slt, %75, %76 : vector<8x1xi32>
      %78 = arith.andi %66, %77 : vector<8x1xi1>
      %cst_52 = arith.constant 0.000000e+00 : f32
      %79 = vector.broadcast %cst_52 : f32 to vector<8x1xf32>
      %80 = arith.select %78, %71, %79 : vector<8x1xi1>, vector<8x1xf32>
      %c0_53 = arith.constant 0 : index
      %c0_54 = arith.constant 0 : index
      %81 = vector.load %arg6[%c0_53, %c0_54] : memref<8x1xf32, #tpu.memory_space<vmem>>, vector<8x1xf32>
      tpu.vector_store %arg6[%c0_53, %c0_54], %80 {strides = array<i32>} : memref<8x1xf32, #tpu.memory_space<vmem>>, vector<8x1xf32>,
    } else {
    }
    return
  }
  func.func @transform_0(%arg0: i32, %arg1: i32) -> (i32, i32) {
    %c0_i32 = arith.constant 0 : i32
    %c0_i32_0 = arith.constant 0 : i32
    return %arg0, %c0_i32 : i32, i32
  }
  func.func @transform_1(%arg0: i32, %arg1: i32) -> (i32, i32) {
    %c0_i32 = arith.constant 0 : i32
    %c0_i32_0 = arith.constant 0 : i32
    return %c0_i32, %arg1 : i32, i32
  }
  func.func @transform_2(%arg0: i32, %arg1: i32) -> (i32, i32) {
    %c0_i32 = arith.constant 0 : i32
    %c0_i32_0 = arith.constant 0 : i32
    return %arg0, %c0_i32 : i32, i32
  }
  func.func @transform_3(%arg0: i32, %arg1: i32) -> (i32, i32) {
    %c0_i32 = arith.constant 0 : i32
    %c0_i32_0 = arith.constant 0 : i32
    return %arg1, %c0_i32 : i32, i32
  }
  func.func @transform_4(%arg0: i32, %arg1: i32) -> (i32, i32) {
    %c0_i32 = arith.constant 0 : i32
    %c0_i32_0 = arith.constant 0 : i32
    return %arg0, %c0_i32 : i32, i32
  }
}

</mosaic_0001>

<bundles_post_ra>
// kernel: tpu_custom_call.1
= control target key start
LH: loop header
LB: loop body
LE: loop exit
PB: predicated region body
PF: predicated region fallthrough
CT: control target
= control target key end

     0   :  { %s643_s15 = smov 0   ;;  %s645_s16 = smov 0   ;;  %s720_s0 = inlined_call_operand.vmem [shape: s32[16,1], index: 0, kind: input, shape index: {}]   ;;  %s721_s1 = inlined_call_operand.vmem [shape: s32[1,16], index: 1, kind: input, shape index: {}]   ;;  %s722_s2 = inlined_call_operand.vmem [shape: bf16[16,128], index: 2, kind: input, shape index: {}]   ;;  %s723_s3 = inlined_call_operand.vmem [shape: bf16[16,128], index: 3, kind: input, shape index: {}]   ;;  %s724_s4 = inlined_call_operand.vmem [shape: f32[16,1], index: 4, kind: output, shape index: {}]  }
   0x1   :  { %s647_s17 = smov 0  }
   0x2 LB: > { %s26_s18 = sadd.s32 1, %s609_s16  ;;  %p516_p0 = scmp.ge.s32.totalorder %s613_s17, 1  ;;  %s613_s17 = sphi %s647_s17, %s14_s17   ;;  %s609_s16 = sphi %s645_s16, %s727_s16   ;;  %s605_s15 = sphi %s643_s15, %s726_s15  }
   0x3   : > { %p28_p1 = scmp.ge.s32.totalorder %s26_s18, 2  ;;  %p201_p2 = scmp.lt.s32.totalorder %s613_s17, 3 }
   0x5   : > { %s729_s18 = smov (%p28_p1, %s26_s18), 0  ;;  %p202_p3 = pnand %p516_p0, %p201_p2 }
   0x6   : > { %p237_p4 = scmp.lt.s32.totalorder (!%p202_p3), %s605_s15, 1  ;;  %s524_s21 = sshll.u32 (!%p202_p3), %s605_s15, 3 }
   0x7   : > { %205 = sbr.rel (%p202_p3) target bundleno = 545 (0x221), region = 36  ;;  %p301_p5 = scmp.lt.s32.totalorder (!%p202_p3), %s524_s21, 16 }
   0x8   : > { %s533_s22 = sadd.s32 (!%p202_p3), 8, %s524_s21 }
   0x9   : > { %p526_p6 = scmp.gt.s32.totalorder (!%p202_p3), %s533_s22, 0 }
   0xb   : > { %p676_p7 = pnand (!%p202_p3), %p526_p6, %p301_p5 }
   0xc   : > { %v531_v0 = vld [vmem:[%s723_s3] sm:$0xff]  ;;  %v615_v1 = vmov 0   ;;  %s731_s15 = smov (!%p237_p4, %s605_s15), 1  ;;  %v310_v4 = vlaneseq  ;;  %vm263_vm0 = vcmask 7168   ;;  %v616_v5 = vmov -inf  }
   0xd   : > { %581 = vset.pattern.permute.xlu1 %v615_v1  ;;  %580 = vset.pattern.permute.xlu0 %v615_v1  ;;  %s518_s23 = sshll.u32 %s731_s15, 2  ;;  %s517_s24 = sshll.u32 %s731_s15, 3  ;;  %264 = vst.msk [vmem:[#allocation2] sm:$0xff] %vm263_vm0, %v616_v5  ;;  %v617_v7 = vmov 0.0   ;;  %v312_v8 = vstv %s524_s21  ;;  %v582_v11 = vld [vmem:[%s721_s1] ss:$0 sm:$0xff] }
   0xe   : > { %284 = vmatpush.bf16.xpose.msra.mxu0 %v531_v0  ;;  %s247_s27 = scalar_lea.vmem %s722_s2, %s518_s23  ;;  %s240_s30 = scalar_lea.vmem %s720_s0, %s517_s24  ;;  %v311_v6 = vshrl.u32 %v310_v4, 7  ;;  %265 = vst.msk [vmem:[#allocation3] sm:$0xff] %vm263_vm0, %v617_v7  ;;  %v315_v10 = vand.u32 127, %v310_v4  ;;  %vm332_vm6 = vcmask 130048  }
   0xf   : > { %v268_v2 = vld [vmem:[%s247_s27] sm:$0xf]  ;;  %266 = vst.msk [vmem:[#allocation4] sm:$0xff] %vm263_vm0, %v617_v7  ;;  %s551_s6 = scalar_select %p676_p7, 0, 1 }
  0x10   : > { %v291_v3 = vld [vmem:[%s240_s30] sm:$0xff]  ;;  %267 = vst.msk [vmem:[#allocation5] sm:$0xff] %vm263_vm0, %v617_v7  ;;  %v686_v9 = vadd.s32 %v312_v8, %v311_v6  ;;  %s543_s7 = scalar_select %p676_p7, 1, 0 }
  0x11   : > { %294 = vperm.xlu1 %581, %v291_v3   ;;  %v536_v12 = vstv %s551_s6  ;;  %s257_s12 = scalar_lea.vmem %s724_s4, %s517_s24 }
  0x12   : > { %vm318_vm1 = vcmp.ne.s32.totalorder %v686_v9, %v315_v10  ;;  %v544_v13 = vstv %s543_s7  ;;  %vm537_vm2 = vcmp.ne.s32.totalorder %v536_v12, 0  ;;  %vm405_vm12 = vcmp.lt.s32.totalorder %v686_v9, 16 }
  0x13   : > { %vm545_vm5 = vcmp.ne.s32.totalorder %v544_v13, 0 }
  0x14   : > { %v336_v27 = vld [vmem:[#allocation2] sm:$0xff] }
  0x15   : > { %285 = vmatmul.bf16.vlgmr.msra.gmra.mxu0 %v268_v2  ;;  %v349_v45 = vld [vmem:[#allocation3] sm:$0xff] }
  0x16   : > { %v358_v51 = vld [vmem:[#allocation4] sm:$0xff] }
  0x17   : > { %v365_v31 = vld [vmem:[#allocation5] sm:$0xff] }
  0x83   : > { %v295_v14 = vpop.permute.xlu1 %294 }
  0x84   : > { %vm297_vm3 = vcmp.eq.s32.totalorder %v295_v14, %v582_v11 }
  0x85   : > { %vm320_vm4 = vmand %vm318_vm1, %vm297_vm3  ;;  %v528_v15 = vsel %vm297_vm3, 1.0, %v617_v7 }
  0x86   : > { %v527_v16 = vsel %vm320_vm4, 1.0, %v617_v7 }
  0x87   : > { %v542_v17 = vsel %vm537_vm2, %v527_v16, 0 }
  0x88   : > { %v550_v18 = vsel %vm545_vm5, %v528_v15, %v542_v17 }
  0x89   : > { %v366_v26 = vsel %vm332_vm6, %v550_v18, 0.0 }
  0x8a   : > { %367 = vadd.xlane.f32.xlu1 %v366_v26 }
  0x92   : > { %v286_v19 = vpop.f32.mrf.mxu0 }
  0x93   : > { %v290_v20 = vmul.f32 14.285714, %v286_v19 }
  0x95   : > { %v319_v21 = vsel %vm318_vm1, %v290_v20, -inf  ;;  %v359_v39 = vmul.f32 %v550_v18, %v290_v20 }
  0x96   : > { %v538_v22 = vsel %vm537_vm2, %v319_v21, 0 }
  0x97   : > { %v546_v23 = vsel %vm545_vm5, %v290_v20, %v538_v22  ;;  %v360_v40 = vsel %vm332_vm6, %v359_v39, 0.0 }
  0x98   : > { %v333_v24 = vsel %vm332_vm6, %v546_v23, -inf }
  0x99   : > { %334 = vmax.xlane.f32.xlu0 %v333_v24 }
  0x9a   : > { %v288_v25 = vpop.f32.mrf.mxu0 }
  0xfd   : > { %v368_v32 = vpop.xlane.xlu1 %367 }
  0xfe   : > { %v369_v33 = vadd.f32 %v368_v32, %v365_v31 }
 0x100   : > { %370 = vst.msk [vmem:[#allocation5] sm:$0xff] %vm263_vm0, %v369_v33 }
 0x107   : > { %v380_v42 = vld [vmem:[#allocation5] sm:$0xff] }
 0x108   : > { %vm383_vm7 = vcmp.gt.f32.partialorder %v380_v42, 0.0 }
 0x109   : > { %v384_v43 = vsel %vm383_vm7, %v380_v42, 1.0  ;;  %vm406_vm13 = vmand %vm383_vm7, %vm405_vm12 }
 0x10a   : > { %vm390_vm8 = vweird.f32 %v384_v43  ;;  %v396_v58 = vand.u32 2147483648, %v384_v43  ;;  %v394_v61 = vand.u32 2147483647, %v384_v43 }
 0x10c   : > { %v335_v28 = vpop.xlane.xlu0 %334  ;;  %v397_v0 = vor.u32 1.1754944e-38, %v396_v58  ;;  %vm395_vm11 = vcmp.eq.f32.partialorder %v394_v61, 8.507059e+37 }
 0x10d   : > { %v337_v29 = vmax.f32 %v336_v27, %v335_v28 }
 0x10f   : > { %v338_v30 = vsub.f32 %v336_v27, %v337_v29  ;;  %357 = vst.msk [vmem:[#allocation2] sm:$0xff] %vm263_vm0, %v337_v29  ;;  %343 = vperm.xlu0 %580, %v337_v29  }
 0x111   : > { %v339_v41 = vmul.f32 1.442695, %v338_v30 }
 0x116   : > { %v374_v62 = vld [vmem:[#allocation2] sm:$0xff] }
 0x181   : > { %v344_v34 = vpop.permute.xlu0 %343 }
 0x182   : > { %v346_v35 = vsub.f32 %v546_v23, %v344_v34 }
 0x184   : > { %v347_v36 = vmul.f32 1.442695, %v346_v35 }
 0x186   : > { %583 = vpow2.f32 %v347_v36 }
 0x187   : > { %585 = vpow2.f32 %v339_v41 }
 0x188   : > { %587 = vrcp.f32 %v384_v43 }
 0x18c   : > { %v584_v37 = vpop.eup %583 }
 0x18d   : > { %v351_v38 = vsel %vm332_vm6, %v584_v37, 0.0  ;;  %v586_v44 = vpop.eup %585 }
 0x18e   : > { %352 = vadd.xlane.f32.xlu2 %v351_v38  ;;  %v350_v46 = vmul.f32 %v586_v44, %v349_v45  ;;  %v588_v49 = vpop.eup %587 }
 0x18f   : > { %v386_v50 = vmul.f32 %v588_v49, %v384_v43  ;;  %vm391_vm9 = vweird.f32 %v588_v49 }
 0x190   : > { %vm392_vm10 = vmor %vm390_vm8, %vm391_vm9 }
 0x191   : > { %v387_v54 = vsub.f32 1.0, %v386_v50 }
 0x193   : > { %v388_v56 = vmul.f32 %v588_v49, %v387_v54 }
 0x195   : > { %v389_v60 = vadd.f32 %v588_v49, %v388_v56 }
 0x196   : > { %361 = vadd.xlane.f32.xlu2 %v360_v40 }
 0x197   : > { %v393_v2 = vsel %vm392_vm10, %v588_v49, %v389_v60 }
 0x198   : > { %v398_v5 = vsel %vm395_vm11, %v397_v0, %v393_v2 }
 0x201   : > { %v353_v47 = vpop.xlane.xlu2 %352 }
 0x202   : > { %v354_v48 = vadd.f32 %v353_v47, %v350_v46 }
 0x204   : > { %356 = vst.msk [vmem:[#allocation3] sm:$0xff] %vm263_vm0, %v354_v48 }
 0x209   : > { %v362_v52 = vpop.xlane.xlu2 %361 }
 0x20a   : > { %v363_v53 = vadd.f32 %v362_v52, %v358_v51 }
 0x20b   : > { %v375_v55 = vld [vmem:[#allocation3] sm:$0xff] }
 0x20c   : > { %589 = vlog2.f32 %v375_v55  ;;  %364 = vst.msk [vmem:[#allocation4] sm:$0xff] %vm263_vm0, %v363_v53 }
 0x212   : > { %v590_v57 = vpop.eup %589 }
 0x213   : > { %v377_v59 = vmul.f32 0.6931472, %v590_v57  ;;  %v379_v3 = vld [vmem:[#allocation4] sm:$0xff] }
 0x215   : > { %v378_v63 = vadd.f32 %v377_v59, %v374_v62 }
 0x217   : > { %v381_v1 = vmul.f32 %v380_v42, %v378_v63 }
 0x219   : > { %v382_v4 = vsub.f32 %v379_v3, %v381_v1 }
 0x21b   : > { %v399_v6 = vmul.f32 %v398_v5, %v382_v4 }
 0x21d   : > { %v400_v7 = vmul.f32 -1.0, %v399_v6 }
 0x21f   : > { %v407_v8 = vsel %vm406_vm13, %v400_v7, 0.0 }
 0x220   : > { %408 = vst.msk [vmem:[%s257_s12] sm:$0xff] %vm263_vm0, %v407_v8 }
 0x221 PF: > { %s14_s17 = sadd.s32 1, %s613_s17   ;;  %s726_s15 = smov %s609_s16 }
 0x222   : > { %p11_p8 = scmp.ge.s32.totalorder %s14_s17, 4   ;;  %s727_s16 = smov %s729_s18 }
 0x224   :  { %13 = sbr.rel (!%p11_p8) target bundleno = 2 (0x2), region = 91 }

</bundles_post_ra>
